<compile_context>
chip_gen: v6e
topology: v6e:2x2x1
jax: 0.10.0
libtpu: 0.0.40
codegen_flags: <defaults>
</compile_context>

<pallas_src>
import jax
import jax.numpy as jnp
from jax.experimental import pallas as pl
from jax.experimental.pallas import tpu as pltpu


_LANE = 128
_NEG_INF = -1e30  # effective -inf for padded class columns
_TB_MAX = 4096


def _round_up(v: int, m: int) -> int:
    return ((v + m - 1) // m) * m


def _mlp_softmax_kernel(x_ref, w1_ref, b1_ref, w2_ref, b2_ref, o_ref):
    # x_ref : (TB, D)  f32
    # w1_ref: (D, H)   bf16 (pre-cast in wrapper)
    # b1_ref: (1, H)   f32
    # w2_ref: (H, CP)  bf16 (padded columns are exactly 0)
    # b2_ref: (1, CP)  f32  (padded columns are -1e30)
    # o_ref : (TB, C)  f32  (unpadded output)
    x = x_ref[...]

    # fc1 + LeakyReLU: bf16 MXU operands, f32 accumulation; epilogue in f32.
    h = jnp.dot(x.astype(jnp.bfloat16), w1_ref[...],
                preferred_element_type=jnp.float32) + b1_ref[...]
    h = jnp.maximum(h, 0.01 * h)

    # fc2 on the lane-dense (padded) class dim; still f32 accumulate + bias.
    logits = jnp.dot(h.astype(jnp.bfloat16), w2_ref[...],
                     preferred_element_type=jnp.float32) + b2_ref[...]

    # Numerically stable row softmax.  Padded columns carry a -1e30 bias and
    # zero weight columns, so exp() == 0 there: they perturb neither the max
    # nor the sum and real rows still normalize to 1.
    m = jnp.max(logits, axis=1, keepdims=True)
    e = jnp.exp(logits - m)
    denom = jnp.sum(e, axis=1, keepdims=True)
    probs = e * pl.reciprocal(denom, approx=True)

    # Write back only the C real class columns (unpadded, ~12.8x fewer bytes).
    o_ref[...] = probs[:, :o_ref.shape[1]].astype(o_ref.dtype)


def multiclass_discriminator_forward(x, w1, b1, w2, b2):
    """x: (B, D); w1: (D, 128); b1: (128,); w2: (128, C); b2: (C,) -> (B, C)."""
    B, D = x.shape
    H = w1.shape[1]
    C = w2.shape[1]

    # ---- one-time, compute-side-only class padding + bf16 weight cast -------
    CP = _round_up(C, _LANE)
    w1b = w1.astype(jnp.bfloat16)
    w2p = jnp.pad(w2, ((0, 0), (0, CP - C))).astype(jnp.bfloat16)  # zero pad cols
    b2p = jnp.pad(b2, (0, CP - C), constant_values=_NEG_INF).reshape(1, CP)
    b1_2d = b1.reshape(1, H)

    # ---- batch tiling --------------------------------------------------------
    # Large tiles amortize per-step pipeline overhead; for bigger batches keep
    # >= 2 grid steps (>= 4 once B is large) so v7x's two TensorCores both get
    # work.  No jnp.pad of x: pl.cdiv grid + Pallas boundary clamping handle
    # a ragged final block (its garbage rows are never written out-of-bounds).
    if B <= 1024:
        TB = max(B, 1)                      # single tile; block dim == array dim
    else:
        steps = 2 if B < 8192 else 4
        TB = min(_TB_MAX, _round_up(pl.cdiv(B, steps), 8))
    grid = (pl.cdiv(B, TB),)

    vmem = pltpu.MemorySpace.VMEM
    out = pl.pallas_call(
        _mlp_softmax_kernel,
        out_shape=jax.ShapeDtypeStruct((B, C), jnp.float32),
        grid=grid,
        in_specs=[
            pl.BlockSpec((TB, D), lambda i: (i, 0), memory_space=vmem),
            pl.BlockSpec((D, H), lambda i: (0, 0), memory_space=vmem),
            pl.BlockSpec((1, H), lambda i: (0, 0), memory_space=vmem),
            pl.BlockSpec((H, CP), lambda i: (0, 0), memory_space=vmem),
            pl.BlockSpec((1, CP), lambda i: (0, 0), memory_space=vmem),
        ],
        out_specs=pl.BlockSpec((TB, C), lambda i: (i, 0), memory_space=vmem),
        compiler_params=pltpu.CompilerParams(
            dimension_semantics=("parallel",)),
        cost_estimate=pl.CostEstimate(
            flops=2 * B * (D * H + H * CP),
            transcendentals=B * (CP + 1),
            bytes_accessed=(4 * B * D                 # x (f32)
                            + 2 * (D * H + H * CP)    # bf16 weights
                            + 4 * (H + CP)            # f32 biases
                            + 4 * B * C),             # unpadded f32 output
        ),
    )(x, w1b, b1_2d, w2p, b2p)

    return out


def _reference_forward(x, w1, b1, w2, b2):
    h = x @ w1 + b1
    h = jnp.where(h >= 0.0, h, 0.01 * h)
    logits = h @ w2 + b2
    return jax.nn.softmax(logits, axis=1)


if __name__ == "__main__":
    # Module-consistent shapes: input_dim=32, hidden=128, num_class=10.
    D, H, C = 32, 128, 10

    key = jax.random.PRNGKey(0)
    kx, kw1, kb1, kw2, kb2, kx2 = jax.random.split(key, 6)

    # Deterministic PyTorch-Linear-like init, stored as (in, out) so the kernel
    # computes x @ W directly (== x @ W_pt.T).
    lim1 = 1.0 / (D ** 0.5)
    w1 = jax.random.uniform(kw1, (D, H), minval=-lim1, maxval=lim1, dtype=jnp.float32)
    b1 = jax.random.uniform(kb1, (H,), minval=-lim1, maxval=lim1, dtype=jnp.float32)
    lim2 = 1.0 / (H ** 0.5)
    w2 = jax.random.uniform(kw2, (H, C), minval=-lim2, maxval=lim2, dtype=jnp.float32)
    b2 = jax.random.uniform(kb2, (C,), minval=-lim2, maxval=lim2, dtype=jnp.float32)

    # Small-batch check (single-tile grid).
    B = 8
    x = jax.random.normal(kx, (B, D), dtype=jnp.float32)
    out = jax.block_until_ready(multiclass_discriminator_forward(x, w1, b1, w2, b2))
    ref = _reference_forward(x, w1, b1, w2, b2)
    assert out.shape == (B, C)
    # bf16 matmul operands + approx reciprocal -> compare against the f32 ref
    # with tolerance above the bf16 rounding floor at these scales.
    assert jnp.allclose(out, ref, atol=1e-2, rtol=0.0)
    assert jnp.allclose(jnp.sum(out, axis=1), jnp.ones((B,)), atol=1e-2)

    # Multi-step 'parallel' grid check (2 tiles of 1024 rows, no padding).
    B2 = 2048
    x2 = jax.random.normal(kx2, (B2, D), dtype=jnp.float32)
    out2 = jax.block_until_ready(multiclass_discriminator_forward(x2, w1, b1, w2, b2))
    ref2 = _reference_forward(x2, w1, b1, w2, b2)
    assert out2.shape == (B2, C)
    # Slightly wider tolerance: worst row over 2048 samples under bf16 rounding.
    assert jnp.allclose(out2, ref2, atol=2e-2, rtol=0.0)
    assert jnp.allclose(jnp.sum(out2, axis=1), jnp.ones((B2,)), atol=1e-2)

    print("KERNEL_OK")
</pallas_src>

<mosaic_0001>
module attributes {stable_mosaic.version = 11 : i64} {
  func.func @_mlp_softmax_kernel(%arg0: i32, %arg1: memref<8x32xf32, #tpu.memory_space<vmem>>, %arg2: memref<32x128xbf16, #tpu.memory_space<vmem>>, %arg3: memref<1x128xf32, #tpu.memory_space<vmem>>, %arg4: memref<128x128xbf16, #tpu.memory_space<vmem>>, %arg5: memref<1x128xf32, #tpu.memory_space<vmem>>, %arg6: memref<8x10xf32, #tpu.memory_space<vmem>>) attributes {dimension_semantics = [#tpu.dimension_semantics<parallel>], iteration_bounds = array<i64: 1>, scalar_prefetch = 0 : i64, scratch_operands = 0 : i64, tpu.core_type = #tpu.core_type<tc>, window_params = [{transform_indices = @transform_0, window_bounds = array<i64: 8, 32>}, {pipeline_mode = #tpu.pipeline_mode<synchronous>, transform_indices = @transform_1, window_bounds = array<i64: 32, 128>}, {pipeline_mode = #tpu.pipeline_mode<synchronous>, transform_indices = @transform_2, window_bounds = array<i64: 1, 128>}, {pipeline_mode = #tpu.pipeline_mode<synchronous>, transform_indices = @transform_3, window_bounds = array<i64: 128, 128>}, {pipeline_mode = #tpu.pipeline_mode<synchronous>, transform_indices = @transform_4, window_bounds = array<i64: 1, 128>}, {transform_indices = @transform_5, window_bounds = array<i64: 8, 10>}]} {
    %c0 = arith.constant 0 : index
    %c0_0 = arith.constant 0 : index
    %0 = vector.load %arg1[%c0, %c0_0] : memref<8x32xf32, #tpu.memory_space<vmem>>, vector<8x32xf32>
    %1 = arith.truncf %0 : vector<8x32xf32> to vector<8x32xbf16>
    %c0_1 = arith.constant 0 : index
    %c0_2 = arith.constant 0 : index
    %2 = vector.load %arg2[%c0_1, %c0_2] : memref<32x128xbf16, #tpu.memory_space<vmem>>, vector<32x128xbf16>
    %cst = arith.constant dense<0.000000e+00> : vector<8x128xf32>
    %3 = tpu.matmul %1, %2, %cst {dimension_numbers = #tpu.dot_dimension_numbers<[1], [0], [0], [1], [0, 0, 1, 1], [], []>} : vector<8x32xbf16>, vector<32x128xbf16>, vector<8x128xf32> -> vector<8x128xf32>
    %c0_3 = arith.constant 0 : index
    %c0_4 = arith.constant 0 : index
    %4 = vector.load %arg3[%c0_3, %c0_4] : memref<1x128xf32, #tpu.memory_space<vmem>>, vector<1x128xf32>
    %5 = vector.broadcast %4 : vector<1x128xf32> to vector<8x128xf32>
    %6 = arith.addf %3, %5 : vector<8x128xf32>
    %cst_5 = arith.constant 0.00999999977 : f32
    %7 = vector.broadcast %cst_5 : f32 to vector<8x128xf32>
    %8 = arith.mulf %7, %6 : vector<8x128xf32>
    %9 = arith.maximumf %6, %8 : vector<8x128xf32>
    %10 = arith.truncf %9 : vector<8x128xf32> to vector<8x128xbf16>
    %c0_6 = arith.constant 0 : index
    %c0_7 = arith.constant 0 : index
    %11 = vector.load %arg4[%c0_6, %c0_7] : memref<128x128xbf16, #tpu.memory_space<vmem>>, vector<128x128xbf16>
    %cst_8 = arith.constant dense<0.000000e+00> : vector<8x128xf32>
    %12 = tpu.matmul %10, %11, %cst_8 {dimension_numbers = #tpu.dot_dimension_numbers<[1], [0], [0], [1], [0, 0, 1, 1], [], []>} : vector<8x128xbf16>, vector<128x128xbf16>, vector<8x128xf32> -> vector<8x128xf32>
    %c0_9 = arith.constant 0 : index
    %c0_10 = arith.constant 0 : index
    %13 = vector.load %arg5[%c0_9, %c0_10] : memref<1x128xf32, #tpu.memory_space<vmem>>, vector<1x128xf32>
    %14 = vector.broadcast %13 : vector<1x128xf32> to vector<8x128xf32>
    %15 = arith.addf %12, %14 : vector<8x128xf32>
    %cst_11 = arith.constant dense<0xFF800000> : vector<8xf32>
    %16 = vector.multi_reduction <maximumf>, %15, %cst_11 [1] : vector<8x128xf32> to vector<8xf32>
    %17 = vector.shape_cast %16 : vector<8xf32> to vector<8x1xf32>
    %18 = vector.broadcast %17 : vector<8x1xf32> to vector<8x128xf32>
    %19 = arith.subf %15, %18 : vector<8x128xf32>
    %20 = math.exp %19 : vector<8x128xf32>
    %cst_12 = arith.constant dense<0.000000e+00> : vector<8xf32>
    %21 = vector.multi_reduction <add>, %20, %cst_12 [1] : vector<8x128xf32> to vector<8xf32>
    %22 = vector.shape_cast %21 : vector<8xf32> to vector<8x1xf32>
    %23 = tpu.reciprocal %22 {approx = true} : vector<8x1xf32> -> vector<8x1xf32>
    %24 = vector.broadcast %23 : vector<8x1xf32> to vector<8x128xf32>
    %25 = arith.mulf %20, %24 : vector<8x128xf32>
    %26 = vector.extract_strided_slice %25 {offsets = [0, 0], sizes = [8, 10], strides = [1, 1]} : vector<8x128xf32> to vector<8x10xf32>
    %c0_13 = arith.constant 0 : index
    %c0_14 = arith.constant 0 : index
    %27 = vector.load %arg6[%c0_13, %c0_14] : memref<8x10xf32, #tpu.memory_space<vmem>>, vector<8x10xf32>
    tpu.vector_store %arg6[%c0_13, %c0_14], %26 {strides = array<i32>} : memref<8x10xf32, #tpu.memory_space<vmem>>, vector<8x10xf32>,
    return
  }
  func.func @transform_0(%arg0: i32) -> (i32, i32) {
    %c0_i32 = arith.constant 0 : i32
    %c0_i32_0 = arith.constant 0 : i32
    return %arg0, %c0_i32 : i32, i32
  }
  func.func @transform_1(%arg0: i32) -> (i32, i32) {
    %c0_i32 = arith.constant 0 : i32
    %c0_i32_0 = arith.constant 0 : i32
    %c0_i32_1 = arith.constant 0 : i32
    return %c0_i32, %c0_i32_0 : i32, i32
  }
  func.func @transform_2(%arg0: i32) -> (i32, i32) {
    %c0_i32 = arith.constant 0 : i32
    %c0_i32_0 = arith.constant 0 : i32
    %c0_i32_1 = arith.constant 0 : i32
    return %c0_i32, %c0_i32_0 : i32, i32
  }
  func.func @transform_3(%arg0: i32) -> (i32, i32) {
    %c0_i32 = arith.constant 0 : i32
    %c0_i32_0 = arith.constant 0 : i32
    %c0_i32_1 = arith.constant 0 : i32
    return %c0_i32, %c0_i32_0 : i32, i32
  }
  func.func @transform_4(%arg0: i32) -> (i32, i32) {
    %c0_i32 = arith.constant 0 : i32
    %c0_i32_0 = arith.constant 0 : i32
    %c0_i32_1 = arith.constant 0 : i32
    return %c0_i32, %c0_i32_0 : i32, i32
  }
  func.func @transform_5(%arg0: i32) -> (i32, i32) {
    %c0_i32 = arith.constant 0 : i32
    %c0_i32_0 = arith.constant 0 : i32
    return %arg0, %c0_i32 : i32, i32
  }
}

</mosaic_0001>

<bundles_post_ra>
// kernel: tpu_custom_call.1
= control target key start
LH: loop header
LB: loop body
LE: loop exit
PB: predicated region body
PF: predicated region fallthrough
CT: control target
= control target key end

     0   :  { %10 = vsyncpa [#allocation3], 0  ;;  %s488_s0 = inlined_call_operand.hbm [shape: f32[8,32], index: 0, kind: input, shape index: {}]   ;;  %s489_s1 = inlined_call_operand.hbm [shape: bf16[32,128], index: 1, kind: input, shape index: {}]   ;;  %s490_s2 = inlined_call_operand.vmem [shape: f32[1,128], index: 2, kind: input, shape index: {}]   ;;  %s491_s3 = inlined_call_operand.hbm [shape: bf16[128,128], index: 3, kind: input, shape index: {}]   ;;  %s492_s4 = inlined_call_operand.vmem [shape: f32[1,128], index: 4, kind: input, shape index: {}]   ;;  %s493_s5 = inlined_call_operand.hbm [shape: f32[8,10], index: 5, kind: output, shape index: {}]  }
   0x1   :  { %11 = vsyncpa [#allocation6], 0 }
   0x2   :  { %12 = vsyncpa [#allocation4], 0  ;;  %s432_s18 = smov [#allocation5]  }
   0x3   :  { %s28_s19 = sshll.u32 %s432_s18, 4  ;;  %s29_s19 = int_to_ptr.vmem [resolvable:$true] %s28_s19 }
   0x4   :  { %s354_s20 = scalar_lea.vmem %s29_s19, 256  ;;  %p359_p1 = scmp.lt.s32.totalorder %s29_s19, %s29_s19 }
   0x5   :  { %p355_p0 = scmp.ne.s32.totalorder %s29_s19, %s354_s20  ;;  %p360_p2 = scmp.lt.s32.totalorder %s354_s20, %s354_s20 }
   0x7   :  { %p361_p3 = por %p360_p2, %p359_p1 }
   0x9   :  { %p362_p4 = pnand %p361_p3, %p355_p0 }
   0xb   :  { %365 = shalt.err (!%p362_p4)
}
   0xc   :  { %s433_s21 = smov 64   ;;  %s434_s22 = smov 4  }
   0xd   :  { %34 = dma.hbm_to_vmem [thread:$0]  %s489_s1, 256, %s29_s19, [#allocation6], %s433_s21, %s433_s21, %s434_s22  }
   0xe   :  { %s435_s25 = smov [#allocation2]   ;;  %s436_s27 = smov [#allocation7]  }
   0xf   :  { %s19_s26 = sshll.u32 %s435_s25, 4  ;;  %s42_s28 = sshll.u32 %s436_s27, 4  ;;  %s20_s26 = int_to_ptr.vmem [resolvable:$true] %s19_s26  ;;  %s43_s28 = int_to_ptr.vmem [resolvable:$true] %s42_s28 }
  0x10   :  { %s374_s29 = scalar_lea.vmem %s20_s26, 128  ;;  %p379_p6 = scmp.lt.s32.totalorder %s20_s26, %s20_s26 }
  0x11   :  { %p375_p5 = scmp.ne.s32.totalorder %s20_s26, %s374_s29  ;;  %p380_p7 = scmp.lt.s32.totalorder %s374_s29, %s374_s29 }
  0x13   :  { %p381_p8 = por %p380_p7, %p379_p6 }
  0x15   :  { %p382_p9 = pnand %p381_p8, %p375_p5 }
  0x17   :  { %385 = shalt.err (!%p382_p9)
}
  0x18   :  { %22 = dma.hbm_to_vmem [thread:$0]  %s488_s0, 128, %s20_s26, [#allocation3]  }
  0x19   :  { %s394_s7 = scalar_lea.vmem %s43_s28, 1024  ;;  %p399_p11 = scmp.lt.s32.totalorder %s43_s28, %s43_s28 }
  0x1a   :  { %p395_p10 = scmp.ne.s32.totalorder %s43_s28, %s394_s7  ;;  %p400_p12 = scmp.lt.s32.totalorder %s394_s7, %s394_s7 }
  0x1c   :  { %p401_p13 = por %p400_p12, %p399_p11 }
  0x1e   :  { %p402_p0 = pnand %p401_p13, %p395_p10 }
  0x20   :  { %405 = shalt.err (!%p402_p0)
}
  0x21   :  { %48 = dma.hbm_to_vmem [thread:$0]  %s491_s3, 1024, %s43_s28, [#allocation6], %s433_s21, %s433_s21, %s434_s22  }
  0x22   :  { %426 = dma.done.wait [#allocation3], 128  }
  0x23   :  { %427 = vsyncadd [#allocation3], 4294967168 }
  0x24   :  { %428 = dma.done.wait [#allocation6], 1280  }
  0x25   :  { %429 = vsyncadd [#allocation6], 4294966016  ;;  %v437_v0 = vmov 0.0   ;;  %vm438_vm0 = vmmov 0   ;;  %v332_v1 = vld [vmem:[#allocation5 + $0x8] sm:$0xff]   ;;  %v333_v2 = vld [vmem:[#allocation5] sm:$0xff]  }
  0x26   :  { %296 = vmatprep.subr.bf16.mxu0 %v437_v0  ;;  %300 = vmatprep.mubr.msk.bf16.mxu0 %vm438_vm0, %v437_v0  ;;  %v61_v3 = vld [vmem:[#allocation2] sm:$0xff]  ;;  %v334_v4 = vld [vmem:[#allocation7 + $0x38] sm:$0xff]   ;;  %v335_v6 = vld [vmem:[#allocation7 + $0x30] sm:$0xff]   ;;  %vm86_vm1 = vcmask 261120   ;;  %vm253_vm2 = vcmask 80896  }
  0x27   :  { %304 = vmatprep.subr.bf16.mxu1 %v437_v0  ;;  %320 = vmatprep.mubr.msk.bf16.mxu1 %vm438_vm0, %v437_v0  ;;  %v62_v5 = vpack.c.bf16 %v61_v3, %v61_v3  ;;  %v336_v7 = vld [vmem:[#allocation7 + $0x28] sm:$0xff]   ;;  %v337_v8 = vld [vmem:[#allocation7 + $0x20] sm:$0xff]   ;;  %v338_v9 = vld [vmem:[#allocation7 + $0x18] sm:$0xff]  }
  0x28   :  { %297 = vmatpush3.bf16.msra.mxu0 %v332_v1  ;;  %305 = vmatpush3.bf16.msra.mxu1 %v334_v4  ;;  %v339_v10 = vld [vmem:[#allocation7 + $0x10] sm:$0xff]   ;;  %v340_v11 = vld [vmem:[#allocation7 + $0x8] sm:$0xff]   ;;  %v341_v12 = vld [vmem:[#allocation7] sm:$0xff]  }
  0x29   :  { %298 = vmatprep.subr.bf16.mxu0 %v437_v0  ;;  %306 = vmatprep.subr.bf16.mxu1 %v437_v0  ;;  %v271_v13 = vld [vmem:[%s490_s2] ss:$0 sm:$0xff]  ;;  %s439_s2 = smov [#allocation8]  }
  0x2a   :  { %v275_v22 = vld [vmem:[%s492_s4] ss:$0 sm:$0xff]  ;;  %s261_s11 = sshll.u32 %s439_s2, 4  ;;  %s262_s11 = int_to_ptr.vmem [resolvable:$true] %s261_s11 }
  0x2b   :  { %s406_s4 = scalar_lea.vmem %s262_s11, 128  ;;  %p411_p2 = scmp.lt.s32.totalorder %s262_s11, %s262_s11 }
  0x2c   :  { %299 = vmatpush3.bf16.msra.mxu0 %v333_v2  ;;  %307 = vmatpush3.bf16.msra.mxu1 %v335_v6  ;;  %p407_p1 = scmp.ne.s32.totalorder %s262_s11, %s406_s4  ;;  %p412_p3 = scmp.lt.s32.totalorder %s406_s4, %s406_s4 }
  0x2d   :  { %308 = vmatprep.subr.bf16.mxu1 %v437_v0 }
  0x2e   :  { %p413_p4 = por %p412_p3, %p411_p2 }
  0x2f   :  { %301 = vmatmul.mubr.msk.bf16.vlgmr.msra.gmra.mxu0 %vm86_vm1, %v62_v5 }
  0x30   :  { %309 = vmatpush3.bf16.msra.mxu1 %v336_v7  ;;  %p414_p5 = pnand %p413_p4, %p407_p1 }
  0x31   :  { %310 = vmatprep.subr.bf16.mxu1 %v437_v0 }
  0x34   :  { %311 = vmatpush3.bf16.msra.mxu1 %v337_v8 }
  0x35   :  { %312 = vmatprep.subr.bf16.mxu1 %v437_v0 }
  0x38   :  { %313 = vmatpush3.bf16.msra.mxu1 %v338_v9 }
  0x39   :  { %314 = vmatprep.subr.bf16.mxu1 %v437_v0 }
  0x3c   :  { %315 = vmatpush3.bf16.msra.mxu1 %v339_v10 }
  0x3d   :  { %316 = vmatprep.subr.bf16.mxu1 %v437_v0 }
  0x40   :  { %317 = vmatpush3.bf16.msra.mxu1 %v340_v11 }
  0x41   :  { %318 = vmatprep.subr.bf16.mxu1 %v437_v0 }
  0x44   :  { %319 = vmatpush3.bf16.msra.mxu1 %v341_v12 }
  0xef   :  { %v124_v14 = vpop.f32.mrf.mxu0 }
  0xf0   :  { %v125_v15 = vadd.f32 %v271_v13, %v124_v14 }
  0xf1   :  { %v302_v16 = vpop.f32.mrf.mxu0 }
  0xf2   :  { %v130_v17 = vmul.f32 0.01, %v125_v15 }
  0xf3   :  { %v127_v18 = vpop.f32.mrf.mxu0 }
  0xf4   :  { %v131_v19 = vmax.f32 %v125_v15, %v130_v17 }
  0xf5   :  { %v303_v20 = vpop.f32.mrf.mxu0 }
  0xf6   :  { %v132_v21 = vpack.c.bf16 %v131_v19, %v131_v19 }
  0xf8   :  { %321 = vmatmul.mubr.bf16.vlgmr.msra.gmra.mxu1 %v132_v21 }
 0x1b8   :  { %v238_v23 = vpop.f32.mrf.mxu1 }
 0x1b9   :  { %v239_v24 = vadd.f32 %v275_v22, %v238_v23 }
 0x1ba   :  { %v322_v25 = vpop.f32.mrf.mxu1 }
 0x1bb   :  { %244 = vmax.xlane.f32.xlu0 %v239_v24 }
 0x1bc   :  { %v241_v26 = vpop.f32.mrf.mxu1 }
 0x1be   :  { %v323_v27 = vpop.f32.mrf.mxu1 }
 0x244   :  { %v245_v28 = vpop.xlane.xlu0 %244 }
 0x245   :  { %v246_v29 = vsub.f32 %v239_v24, %v245_v28 }
 0x247   :  { %v247_v30 = vmul.f32 1.442695, %v246_v29 }
 0x249   :  { %342 = vpow2.f32 %v247_v30 }
 0x256   :  { %v343_v31 = vpop.eup %342 }
 0x257   :  { %249 = vadd.xlane.f32.xlu0 %v343_v31 }
 0x2e0   :  { %v250_v32 = vpop.xlane.xlu0 %249 }
 0x2e1   :  { %344 = vrcp.f32 %v250_v32 }
 0x2ee   :  { %v345_v33 = vpop.eup %344 }
 0x2ef   :  { %v252_v34 = vmul.f32 %v345_v33, %v343_v31 }
 0x2f1   :  { %254 = vst.msk [vmem:[#allocation8] sm:$0xff] %vm253_vm2, %v252_v34 }
 0x2f2   :  { %417 = shalt.err (!%p414_p5)
}
 0x2f3   :  { %264 = dma.vmem_to_hbm [thread:$0]  %s262_s11, 128, %s493_s5, [#allocation4]  }
 0x2f4   :  { %430 = dma.done.wait [#allocation4], 128  }
 0x2f5   :  { %431 = vsyncadd [#allocation4], 4294967168 }
 0x2f6   :  { %268 = vsyncpa [#allocation3], 1 }
 0x2f7   :  { %269 = vsyncpa [#allocation6], 1 }
 0x2f8   :  { %270 = vsyncpa [#allocation4], 1 }

</bundles_post_ra>
